<compile_context>
chip_gen: v7x
topology: tpu7x:2x2x1
jax: 0.10.0
libtpu: 0.0.40
codegen_flags: <defaults>
</compile_context>

<pallas_src>
import functools

import jax
import jax.numpy as jnp
from jax.experimental import pallas as pl
from jax.experimental.pallas import tpu as pltpu

LN_EPS = 1e-5
LEAKY_SLOPE = 0.01  # nn.LeakyReLU() default


def _disc_block_kernel(stride, kh, kw, cin, cout, hout, wout, hq,
                       ph_ref, w_ref, b_ref, lnw_ref, lnb_ref, out_ref):
    """One sample per grid step.

    ph_ref : [1, s*s*hq, wq, cin]   stride-phase-decomposed padded input (NHWC order)
    w_ref  : [kh*kw, cin, cout]     conv weights
    b_ref  : [cout, 1]              conv bias
    lnw_ref, lnb_ref : [cout, p]    LayerNorm gamma / beta  (p = hout*wout)
    out_ref: [1, cout, p]
    """
    p = hout * wout

    # Load the per-sample phase slab once.  Slicing / the (hout, wout, cin) -> (p, cin)
    # merge are done in f32 (layout-friendly shape cast: second-minor dim == 8 sublanes).
    ph = ph_ref[0].astype(jnp.float32)            # [s*s*hq, wq, cin]
    w = w_ref[...]                                # [kh*kw, cin, cout] (f32 or bf16)
    cdt = w.dtype

    # Conv2d: accumulate kh*kw shifted-slice matmuls, f32 accumulation on the MXU.
    acc = jnp.zeros((p, cout), jnp.float32)
    for ki in range(kh):                          # static, fully unrolled (kh*kw = 9)
        a, qi = ki % stride, ki // stride
        for kj in range(kw):
            b, qj = kj % stride, kj // stride
            r0 = (a * stride + b) * hq + qi
            patch = ph[r0:r0 + hout, qj:qj + wout, :]      # [hout, wout, cin]
            patch2 = patch.reshape(p, cin).astype(cdt)     # [p, cin]
            acc = acc + jnp.dot(patch2, w[ki * kw + kj],
                                preferred_element_type=jnp.float32)

    # To the final channel-major layout once, then conv bias.
    y = acc.T + b_ref[...]                        # [cout, p] + [cout, 1]

    # Per-sample LayerNorm over (cout, hout, wout); two-pass mean/var for stability.
    inv_cnt = 1.0 / float(cout * p)
    mean = jnp.sum(y) * inv_cnt
    yc = y - mean
    var = jnp.sum(yc * yc) * inv_cnt
    y_norm = yc * jax.lax.rsqrt(var + LN_EPS)

    # LayerNorm affine + LeakyReLU (all f32 VPU work), lane-dense full-block store.
    y_aff = y_norm * lnw_ref[...] + lnb_ref[...]
    out = jnp.where(y_aff >= 0.0, y_aff, LEAKY_SLOPE * y_aff)
    out_ref[0] = out.astype(out_ref.dtype)


def _phase_decompose_nhwc(x_nchw, kh, kw, stride, pad):
    """Pad + decompose by stride phases: [N,C,H,W] -> [N, s*s*hq, wq, C] (NHWC inside).

    ph[n, (a*s+b)*hq + r, c, ci] == x_padded[n, r*s + a, c*s + b, ci]
    Total bytes == padded input (no im2col amplification).
    """
    n, c, h, w = x_nchw.shape
    hout = (h + 2 * pad - kh) // stride + 1
    wout = (w + 2 * pad - kw) // stride + 1
    hq = max(-(-(h + 2 * pad) // stride), (kh - 1) // stride + hout)
    wq = max(-(-(w + 2 * pad) // stride), (kw - 1) // stride + wout)

    x_nhwc = jnp.transpose(x_nchw, (0, 2, 3, 1))
    xp = jnp.pad(x_nhwc, ((0, 0),
                          (pad, hq * stride - h - pad),
                          (pad, wq * stride - w - pad),
                          (0, 0)))
    ph = xp.reshape(n, hq, stride, wq, stride, c)
    ph = jnp.transpose(ph, (0, 2, 4, 1, 3, 5))            # [N, a, b, hq, wq, C]
    ph = ph.reshape(n, stride * stride * hq, wq, c)
    return ph, hout, wout, hq, wq


@functools.partial(jax.jit, static_argnames=("stride", "pad", "use_bf16"))
def discriminator_block(x_nchw, conv_w, conv_b, ln_w, ln_b, *, stride, pad, use_bf16=False):
    """Forward pass of DiscriminatorBlock.

    x_nchw : [N, Cin, Hin, Win]
    conv_w : [Cout, Cin, kh, kw],  conv_b : [Cout]
    ln_w, ln_b : [Cout, Hout, Wout]
    returns [N, Cout, Hout, Wout]
    """
    n = x_nchw.shape[0]
    cout, cin, kh, kw = conv_w.shape

    phases, hout, wout, hq, wq = _phase_decompose_nhwc(x_nchw, kh, kw, stride, pad)
    p = hout * wout
    rows = stride * stride * hq

    # Weights as [kh*kw, Cin, Cout] so the kernel's [P, Cin] patches feed the MXU directly.
    w_r = jnp.transpose(conv_w, (2, 3, 1, 0)).reshape(kh * kw, cin, cout)

    if use_bf16:
        # bf16 MXU operands (valid on v5e/v6e/v7x); halves phase/weight HBM+VMEM traffic.
        # This quantizes the conv inputs+weights to bf16; accumulation stays f32.
        phases = phases.astype(jnp.bfloat16)
        w_r = w_r.astype(jnp.bfloat16)

    b_r = conv_b.reshape(cout, 1).astype(jnp.float32)
    lnw_r = ln_w.reshape(cout, p).astype(jnp.float32)
    lnb_r = ln_b.reshape(cout, p).astype(jnp.float32)

    kernel = functools.partial(_disc_block_kernel,
                               stride, kh, kw, cin, cout, hout, wout, hq)

    out = pl.pallas_call(
        kernel,
        out_shape=jax.ShapeDtypeStruct((n, cout, p), jnp.float32),
        grid=(n,),
        in_specs=[
            pl.BlockSpec((1, rows, wq, cin), lambda i: (i, 0, 0, 0)),
            pl.BlockSpec((kh * kw, cin, cout), lambda i: (0, 0, 0)),
            pl.BlockSpec((cout, 1), lambda i: (0, 0)),
            pl.BlockSpec((cout, p), lambda i: (0, 0)),
            pl.BlockSpec((cout, p), lambda i: (0, 0)),
        ],
        out_specs=pl.BlockSpec((1, cout, p), lambda i: (i, 0, 0)),
        compiler_params=pltpu.CompilerParams(
            dimension_semantics=("parallel",),
            vmem_limit_bytes=32 * 1024 * 1024),
    )(phases, w_r, b_r, lnw_r, lnb_r)

    # [N, Cout, P] -> [N, Cout, Hout, Wout]: contiguous split of the last dim (free).
    return out.reshape(n, cout, hout, wout)


def _reference(x_nchw, conv_w, conv_b, ln_w, ln_b, *, stride, pad):
    """Pure-JAX reference matching the PyTorch module semantics."""
    y = jax.lax.conv_general_dilated(
        x_nchw, conv_w, window_strides=(stride, stride),
        padding=[(pad, pad), (pad, pad)],
        dimension_numbers=("NCHW", "OIHW", "NCHW"))
    y = y + conv_b.reshape(1, -1, 1, 1)
    mean = jnp.mean(y, axis=(1, 2, 3), keepdims=True)
    var = jnp.mean((y - mean) ** 2, axis=(1, 2, 3), keepdims=True)
    y = (y - mean) / jnp.sqrt(var + LN_EPS)
    y = y * ln_w[None] + ln_b[None]
    return jnp.where(y >= 0, y, LEAKY_SLOPE * y)


if __name__ == "__main__":
    # Module config: DiscriminatorBlock(in_channels=4, out_channels=8,
    #                                   kernel_size=3, stride=2, height=8, width=8)
    N, C_IN, H_IN, W_IN = 2, 4, 16, 16
    C_OUT, KSIZE, STRIDE, PAD = 8, 3, 2, 1
    H_OUT = (H_IN + 2 * PAD - KSIZE) // STRIDE + 1   # 8
    W_OUT = (W_IN + 2 * PAD - KSIZE) // STRIDE + 1   # 8

    key = jax.random.PRNGKey(0)
    kx, kw_, kb, klw, klb = jax.random.split(key, 5)

    x = jax.random.normal(kx, (N, C_IN, H_IN, W_IN), dtype=jnp.float32)
    conv_w = 0.1 * jax.random.normal(kw_, (C_OUT, C_IN, KSIZE, KSIZE), dtype=jnp.float32)
    conv_b = 0.1 * jax.random.normal(kb, (C_OUT,), dtype=jnp.float32)
    # Random affine params to exercise the full LayerNorm path deterministically.
    ln_w = 1.0 + 0.1 * jax.random.normal(klw, (C_OUT, H_OUT, W_OUT), dtype=jnp.float32)
    ln_b = 0.1 * jax.random.normal(klb, (C_OUT, H_OUT, W_OUT), dtype=jnp.float32)

    ref = _reference(x, conv_w, conv_b, ln_w, ln_b, stride=STRIDE, pad=PAD)

    # f32 MXU operands (tight correctness check).
    out = discriminator_block(x, conv_w, conv_b, ln_w, ln_b,
                              stride=STRIDE, pad=PAD, use_bf16=False)
    out = jax.block_until_ready(out)
    assert out.shape == (N, C_OUT, H_OUT, W_OUT), out.shape
    assert jnp.allclose(out, ref, atol=1e-4, rtol=1e-4), float(jnp.max(jnp.abs(out - ref)))

    # bf16 MXU operands (v5e/v6e/v7x fast path): f32 accumulation + f32 LN/LeakyReLU.
    out_bf16 = discriminator_block(x, conv_w, conv_b, ln_w, ln_b,
                                   stride=STRIDE, pad=PAD, use_bf16=True)
    out_bf16 = jax.block_until_ready(out_bf16)
    assert out_bf16.shape == (N, C_OUT, H_OUT, W_OUT), out_bf16.shape
    assert jnp.allclose(out_bf16, ref, atol=5e-2, rtol=5e-2), \
        float(jnp.max(jnp.abs(out_bf16 - ref)))

    print("KERNEL_OK")
</pallas_src>

<mosaic_0001>
module attributes {stable_mosaic.version = 11 : i64} {
  func.func @_disc_block_kernel(%arg0: i32, %arg1: memref<1x36x9x4xf32, #tpu.memory_space<vmem>>, %arg2: memref<9x4x8xf32, #tpu.memory_space<vmem>>, %arg3: memref<8x1xf32, #tpu.memory_space<vmem>>, %arg4: memref<8x64xf32, #tpu.memory_space<vmem>>, %arg5: memref<8x64xf32, #tpu.memory_space<vmem>>, %arg6: memref<1x8x64xf32, #tpu.memory_space<vmem>>) attributes {dimension_semantics = [#tpu.dimension_semantics<parallel>], iteration_bounds = array<i64: 2>, scalar_prefetch = 0 : i64, scratch_operands = 0 : i64, tpu.core_type = #tpu.core_type<tc>, window_params = [{transform_indices = @transform_0, window_bounds = array<i64: 1, 36, 9, 4>}, {pipeline_mode = #tpu.pipeline_mode<synchronous>, transform_indices = @transform_1, window_bounds = array<i64: 9, 4, 8>}, {pipeline_mode = #tpu.pipeline_mode<synchronous>, transform_indices = @transform_2, window_bounds = array<i64: 8, 1>}, {pipeline_mode = #tpu.pipeline_mode<synchronous>, transform_indices = @transform_3, window_bounds = array<i64: 8, 64>}, {pipeline_mode = #tpu.pipeline_mode<synchronous>, transform_indices = @transform_4, window_bounds = array<i64: 8, 64>}, {transform_indices = @transform_5, window_bounds = array<i64: 1, 8, 64>}]} {
    %c0 = arith.constant 0 : index
    %c0_0 = arith.constant 0 : index
    %c0_1 = arith.constant 0 : index
    %c0_2 = arith.constant 0 : index
    %0 = vector.load %arg1[%c0, %c0_0, %c0_1, %c0_2] : memref<1x36x9x4xf32, #tpu.memory_space<vmem>>, vector<1x36x9x4xf32>
    %1 = vector.shape_cast %0 : vector<1x36x9x4xf32> to vector<36x9x4xf32>
    %c0_3 = arith.constant 0 : index
    %c0_4 = arith.constant 0 : index
    %c0_5 = arith.constant 0 : index
    %2 = vector.load %arg2[%c0_3, %c0_4, %c0_5] : memref<9x4x8xf32, #tpu.memory_space<vmem>>, vector<9x4x8xf32>
    %cst = arith.constant 0.000000e+00 : f32
    %3 = vector.broadcast %cst : f32 to vector<64x8xf32>
    %4 = vector.extract_strided_slice %1 {offsets = [0, 0, 0], sizes = [8, 8, 4], strides = [1, 1, 1]} : vector<36x9x4xf32> to vector<8x8x4xf32>
    %5 = vector.shape_cast %4 : vector<8x8x4xf32> to vector<64x4xf32>
    %6 = vector.extract_strided_slice %2 {offsets = [0, 0, 0], sizes = [1, 4, 8], strides = [1, 1, 1]} : vector<9x4x8xf32> to vector<1x4x8xf32>
    %7 = vector.shape_cast %6 : vector<1x4x8xf32> to vector<4x8xf32>
    %cst_6 = arith.constant dense<0.000000e+00> : vector<64x8xf32>
    %8 = tpu.matmul %5, %7, %cst_6 {dimension_numbers = #tpu.dot_dimension_numbers<[1], [0], [0], [1], [0, 0, 1, 1], [], []>} : vector<64x4xf32>, vector<4x8xf32>, vector<64x8xf32> -> vector<64x8xf32>
    %9 = arith.addf %3, %8 : vector<64x8xf32>
    %10 = vector.extract_strided_slice %1 {offsets = [9, 0, 0], sizes = [8, 8, 4], strides = [1, 1, 1]} : vector<36x9x4xf32> to vector<8x8x4xf32>
    %11 = vector.shape_cast %10 : vector<8x8x4xf32> to vector<64x4xf32>
    %12 = vector.extract_strided_slice %2 {offsets = [1, 0, 0], sizes = [1, 4, 8], strides = [1, 1, 1]} : vector<9x4x8xf32> to vector<1x4x8xf32>
    %13 = vector.shape_cast %12 : vector<1x4x8xf32> to vector<4x8xf32>
    %cst_7 = arith.constant dense<0.000000e+00> : vector<64x8xf32>
    %14 = tpu.matmul %11, %13, %cst_7 {dimension_numbers = #tpu.dot_dimension_numbers<[1], [0], [0], [1], [0, 0, 1, 1], [], []>} : vector<64x4xf32>, vector<4x8xf32>, vector<64x8xf32> -> vector<64x8xf32>
    %15 = arith.addf %9, %14 : vector<64x8xf32>
    %16 = vector.extract_strided_slice %1 {offsets = [0, 1, 0], sizes = [8, 8, 4], strides = [1, 1, 1]} : vector<36x9x4xf32> to vector<8x8x4xf32>
    %17 = vector.shape_cast %16 : vector<8x8x4xf32> to vector<64x4xf32>
    %18 = vector.extract_strided_slice %2 {offsets = [2, 0, 0], sizes = [1, 4, 8], strides = [1, 1, 1]} : vector<9x4x8xf32> to vector<1x4x8xf32>
    %19 = vector.shape_cast %18 : vector<1x4x8xf32> to vector<4x8xf32>
    %cst_8 = arith.constant dense<0.000000e+00> : vector<64x8xf32>
    %20 = tpu.matmul %17, %19, %cst_8 {dimension_numbers = #tpu.dot_dimension_numbers<[1], [0], [0], [1], [0, 0, 1, 1], [], []>} : vector<64x4xf32>, vector<4x8xf32>, vector<64x8xf32> -> vector<64x8xf32>
    %21 = arith.addf %15, %20 : vector<64x8xf32>
    %22 = vector.extract_strided_slice %1 {offsets = [18, 0, 0], sizes = [8, 8, 4], strides = [1, 1, 1]} : vector<36x9x4xf32> to vector<8x8x4xf32>
    %23 = vector.shape_cast %22 : vector<8x8x4xf32> to vector<64x4xf32>
    %24 = vector.extract_strided_slice %2 {offsets = [3, 0, 0], sizes = [1, 4, 8], strides = [1, 1, 1]} : vector<9x4x8xf32> to vector<1x4x8xf32>
    %25 = vector.shape_cast %24 : vector<1x4x8xf32> to vector<4x8xf32>
    %cst_9 = arith.constant dense<0.000000e+00> : vector<64x8xf32>
    %26 = tpu.matmul %23, %25, %cst_9 {dimension_numbers = #tpu.dot_dimension_numbers<[1], [0], [0], [1], [0, 0, 1, 1], [], []>} : vector<64x4xf32>, vector<4x8xf32>, vector<64x8xf32> -> vector<64x8xf32>
    %27 = arith.addf %21, %26 : vector<64x8xf32>
    %28 = vector.extract_strided_slice %1 {offsets = [27, 0, 0], sizes = [8, 8, 4], strides = [1, 1, 1]} : vector<36x9x4xf32> to vector<8x8x4xf32>
    %29 = vector.shape_cast %28 : vector<8x8x4xf32> to vector<64x4xf32>
    %30 = vector.extract_strided_slice %2 {offsets = [4, 0, 0], sizes = [1, 4, 8], strides = [1, 1, 1]} : vector<9x4x8xf32> to vector<1x4x8xf32>
    %31 = vector.shape_cast %30 : vector<1x4x8xf32> to vector<4x8xf32>
    %cst_10 = arith.constant dense<0.000000e+00> : vector<64x8xf32>
    %32 = tpu.matmul %29, %31, %cst_10 {dimension_numbers = #tpu.dot_dimension_numbers<[1], [0], [0], [1], [0, 0, 1, 1], [], []>} : vector<64x4xf32>, vector<4x8xf32>, vector<64x8xf32> -> vector<64x8xf32>
    %33 = arith.addf %27, %32 : vector<64x8xf32>
    %34 = vector.extract_strided_slice %1 {offsets = [18, 1, 0], sizes = [8, 8, 4], strides = [1, 1, 1]} : vector<36x9x4xf32> to vector<8x8x4xf32>
    %35 = vector.shape_cast %34 : vector<8x8x4xf32> to vector<64x4xf32>
    %36 = vector.extract_strided_slice %2 {offsets = [5, 0, 0], sizes = [1, 4, 8], strides = [1, 1, 1]} : vector<9x4x8xf32> to vector<1x4x8xf32>
    %37 = vector.shape_cast %36 : vector<1x4x8xf32> to vector<4x8xf32>
    %cst_11 = arith.constant dense<0.000000e+00> : vector<64x8xf32>
    %38 = tpu.matmul %35, %37, %cst_11 {dimension_numbers = #tpu.dot_dimension_numbers<[1], [0], [0], [1], [0, 0, 1, 1], [], []>} : vector<64x4xf32>, vector<4x8xf32>, vector<64x8xf32> -> vector<64x8xf32>
    %39 = arith.addf %33, %38 : vector<64x8xf32>
    %40 = vector.extract_strided_slice %1 {offsets = [1, 0, 0], sizes = [8, 8, 4], strides = [1, 1, 1]} : vector<36x9x4xf32> to vector<8x8x4xf32>
    %41 = vector.shape_cast %40 : vector<8x8x4xf32> to vector<64x4xf32>
    %42 = vector.extract_strided_slice %2 {offsets = [6, 0, 0], sizes = [1, 4, 8], strides = [1, 1, 1]} : vector<9x4x8xf32> to vector<1x4x8xf32>
    %43 = vector.shape_cast %42 : vector<1x4x8xf32> to vector<4x8xf32>
    %cst_12 = arith.constant dense<0.000000e+00> : vector<64x8xf32>
    %44 = tpu.matmul %41, %43, %cst_12 {dimension_numbers = #tpu.dot_dimension_numbers<[1], [0], [0], [1], [0, 0, 1, 1], [], []>} : vector<64x4xf32>, vector<4x8xf32>, vector<64x8xf32> -> vector<64x8xf32>
    %45 = arith.addf %39, %44 : vector<64x8xf32>
    %46 = vector.extract_strided_slice %1 {offsets = [10, 0, 0], sizes = [8, 8, 4], strides = [1, 1, 1]} : vector<36x9x4xf32> to vector<8x8x4xf32>
    %47 = vector.shape_cast %46 : vector<8x8x4xf32> to vector<64x4xf32>
    %48 = vector.extract_strided_slice %2 {offsets = [7, 0, 0], sizes = [1, 4, 8], strides = [1, 1, 1]} : vector<9x4x8xf32> to vector<1x4x8xf32>
    %49 = vector.shape_cast %48 : vector<1x4x8xf32> to vector<4x8xf32>
    %cst_13 = arith.constant dense<0.000000e+00> : vector<64x8xf32>
    %50 = tpu.matmul %47, %49, %cst_13 {dimension_numbers = #tpu.dot_dimension_numbers<[1], [0], [0], [1], [0, 0, 1, 1], [], []>} : vector<64x4xf32>, vector<4x8xf32>, vector<64x8xf32> -> vector<64x8xf32>
    %51 = arith.addf %45, %50 : vector<64x8xf32>
    %52 = vector.extract_strided_slice %1 {offsets = [1, 1, 0], sizes = [8, 8, 4], strides = [1, 1, 1]} : vector<36x9x4xf32> to vector<8x8x4xf32>
    %53 = vector.shape_cast %52 : vector<8x8x4xf32> to vector<64x4xf32>
    %54 = vector.extract_strided_slice %2 {offsets = [8, 0, 0], sizes = [1, 4, 8], strides = [1, 1, 1]} : vector<9x4x8xf32> to vector<1x4x8xf32>
    %55 = vector.shape_cast %54 : vector<1x4x8xf32> to vector<4x8xf32>
    %cst_14 = arith.constant dense<0.000000e+00> : vector<64x8xf32>
    %56 = tpu.matmul %53, %55, %cst_14 {dimension_numbers = #tpu.dot_dimension_numbers<[1], [0], [0], [1], [0, 0, 1, 1], [], []>} : vector<64x4xf32>, vector<4x8xf32>, vector<64x8xf32> -> vector<64x8xf32>
    %57 = arith.addf %51, %56 : vector<64x8xf32>
    %58 = tpu.transpose %57, [1, 0] : vector<64x8xf32> -> vector<8x64xf32>
    %c0_15 = arith.constant 0 : index
    %c0_16 = arith.constant 0 : index
    %59 = vector.load %arg3[%c0_15, %c0_16] : memref<8x1xf32, #tpu.memory_space<vmem>>, vector<8x1xf32>
    %60 = vector.broadcast %59 : vector<8x1xf32> to vector<8x64xf32>
    %61 = arith.addf %58, %60 : vector<8x64xf32>
    %62 = vector.shape_cast %61 : vector<8x64xf32> to vector<1x8x64xf32>
    %cst_17 = arith.constant dense<0.000000e+00> : vector<1xf32>
    %63 = vector.multi_reduction <add>, %62, %cst_17 [1, 2] : vector<1x8x64xf32> to vector<1xf32>
    %64 = vector.shape_cast %63 : vector<1xf32> to vector<1x1x1xf32>
    %65 = vector.extract %64[0, 0, 0] : f32 from vector<1x1x1xf32>
    %cst_18 = arith.constant 0.001953125 : f32
    %66 = arith.mulf %65, %cst_18 : f32
    %67 = vector.broadcast %66 : f32 to vector<8x64xf32>
    %68 = arith.subf %61, %67 : vector<8x64xf32>
    %69 = arith.mulf %68, %68 : vector<8x64xf32>
    %70 = vector.shape_cast %69 : vector<8x64xf32> to vector<1x8x64xf32>
    %cst_19 = arith.constant dense<0.000000e+00> : vector<1xf32>
    %71 = vector.multi_reduction <add>, %70, %cst_19 [1, 2] : vector<1x8x64xf32> to vector<1xf32>
    %72 = vector.shape_cast %71 : vector<1xf32> to vector<1x1x1xf32>
    %73 = vector.extract %72[0, 0, 0] : f32 from vector<1x1x1xf32>
    %cst_20 = arith.constant 0.001953125 : f32
    %74 = arith.mulf %73, %cst_20 : f32
    %cst_21 = arith.constant 9.99999974E-6 : f32
    %75 = arith.addf %74, %cst_21 : f32
    %76 = math.rsqrt %75 : f32
    %77 = vector.broadcast %76 : f32 to vector<8x64xf32>
    %78 = arith.mulf %68, %77 : vector<8x64xf32>
    %c0_22 = arith.constant 0 : index
    %c0_23 = arith.constant 0 : index
    %79 = vector.load %arg4[%c0_22, %c0_23] : memref<8x64xf32, #tpu.memory_space<vmem>>, vector<8x64xf32>
    %80 = arith.mulf %78, %79 : vector<8x64xf32>
    %c0_24 = arith.constant 0 : index
    %c0_25 = arith.constant 0 : index
    %81 = vector.load %arg5[%c0_24, %c0_25] : memref<8x64xf32, #tpu.memory_space<vmem>>, vector<8x64xf32>
    %82 = arith.addf %80, %81 : vector<8x64xf32>
    %cst_26 = arith.constant 0.000000e+00 : f32
    %83 = vector.broadcast %cst_26 : f32 to vector<8x64xf32>
    %84 = arith.cmpf oge, %82, %83 : vector<8x64xf32>
    %cst_27 = arith.constant 0.00999999977 : f32
    %85 = vector.broadcast %cst_27 : f32 to vector<8x64xf32>
    %86 = arith.mulf %85, %82 : vector<8x64xf32>
    %87 = arith.select %84, %82, %86 : vector<8x64xi1>, vector<8x64xf32>
    %c0_28 = arith.constant 0 : index
    %c0_29 = arith.constant 0 : index
    %c0_30 = arith.constant 0 : index
    %88 = vector.load %arg6[%c0_28, %c0_29, %c0_30] : memref<1x8x64xf32, #tpu.memory_space<vmem>>, vector<1x8x64xf32>
    %89 = vector.shape_cast %88 : vector<1x8x64xf32> to vector<8x64xf32>
    %90 = vector.shape_cast %87 : vector<8x64xf32> to vector<1x8x64xf32>
    tpu.vector_store %arg6[%c0_28, %c0_29, %c0_30], %90 {strides = array<i32>} : memref<1x8x64xf32, #tpu.memory_space<vmem>>, vector<1x8x64xf32>,
    return
  }
  func.func @transform_0(%arg0: i32) -> (i32, i32, i32, i32) {
    %c0_i32 = arith.constant 0 : i32
    %c0_i32_0 = arith.constant 0 : i32
    %c0_i32_1 = arith.constant 0 : i32
    %c0_i32_2 = arith.constant 0 : i32
    return %arg0, %c0_i32, %c0_i32_0, %c0_i32_1 : i32, i32, i32, i32
  }
  func.func @transform_1(%arg0: i32) -> (i32, i32, i32) {
    %c0_i32 = arith.constant 0 : i32
    %c0_i32_0 = arith.constant 0 : i32
    %c0_i32_1 = arith.constant 0 : i32
    %c0_i32_2 = arith.constant 0 : i32
    return %c0_i32, %c0_i32_0, %c0_i32_1 : i32, i32, i32
  }
  func.func @transform_2(%arg0: i32) -> (i32, i32) {
    %c0_i32 = arith.constant 0 : i32
    %c0_i32_0 = arith.constant 0 : i32
    %c0_i32_1 = arith.constant 0 : i32
    return %c0_i32, %c0_i32_0 : i32, i32
  }
  func.func @transform_3(%arg0: i32) -> (i32, i32) {
    %c0_i32 = arith.constant 0 : i32
    %c0_i32_0 = arith.constant 0 : i32
    %c0_i32_1 = arith.constant 0 : i32
    return %c0_i32, %c0_i32_0 : i32, i32
  }
  func.func @transform_4(%arg0: i32) -> (i32, i32) {
    %c0_i32 = arith.constant 0 : i32
    %c0_i32_0 = arith.constant 0 : i32
    %c0_i32_1 = arith.constant 0 : i32
    return %c0_i32, %c0_i32_0 : i32, i32
  }
  func.func @transform_5(%arg0: i32) -> (i32, i32, i32) {
    %c0_i32 = arith.constant 0 : i32
    %c0_i32_0 = arith.constant 0 : i32
    %c0_i32_1 = arith.constant 0 : i32
    return %arg0, %c0_i32, %c0_i32_0 : i32, i32, i32
  }
}

</mosaic_0001>

<bundles_post_ra>
// kernel: discriminator_block.1
= control target key start
LH: loop header
LB: loop body
LE: loop exit
PB: predicated region body
PF: predicated region fallthrough
CT: control target
= control target key end

     0   :  { %s2072_s18 = smov 0   ;;  %s2364_s0 = inlined_call_operand.vmem [shape: f32[2,36,9,4], index: 0, kind: input, shape index: {}]   ;;  %s2365_s1 = inlined_call_operand.vmem [shape: f32[9,4,8], index: 1, kind: input, shape index: {}]   ;;  %s2366_s2 = inlined_call_operand.vmem [shape: f32[8,1], index: 2, kind: input, shape index: {}]   ;;  %s2367_s3 = inlined_call_operand.vmem [shape: f32[8,64], index: 3, kind: input, shape index: {}]   ;;  %s2368_s4 = inlined_call_operand.vmem [shape: f32[8,64], index: 4, kind: input, shape index: {}]   ;;  %s2369_s5 = inlined_call_operand.vmem [shape: f32[2,8,64], index: 5, kind: output, shape index: {}]  }
   0x1 LB: > { %s1650_s19 = sadd.s32 4294967295, %s2039_s18   ;;  %p1654_p0 = scmp.ge.s32.totalorder %s2039_s18, 1  ;;  %s2039_s18 = sphi %s2072_s18, %s15_s18  }
   0x2   : > { %p187_p1 = scmp.lt.s32.totalorder %s2039_s18, 3 }
   0x4   : > { %p188_p2 = pnand %p1654_p0, %p187_p1 }
   0x5   : > { %v2083_v0 = vld [vmem:[%s2365_s1 + $0x10] sm:$0xf] (!%p188_p2)  ;;  %vm308_vm0 = vcmask (!%p188_p2), 1043456   ;;  %v275_v1 = vld [vmem:[%s2365_s1 + $0x4] sm:$0xf] (!%p188_p2)  ;;  %p214_p3 = scmp.lt.s32.totalorder (!%p188_p2), %s1650_s19, 1 }
   0x6   : > { %191 = sbr.rel (%p188_p2) target bundleno = 916 (0x394), region = 40  ;;  %1877 = vmatprep.subr.msk.mxu0 (!%p188_p2), %vm308_vm0, %v2083_v0  ;;  %1821 = vmatprep.subr.msk.mxu1 (!%p188_p2), %vm308_vm0, %v275_v1  ;;  %v279_v2 = vld [vmem:[%s2365_s1 + $0x14] sm:$0xf] (!%p188_p2)  ;;  %v274_v3 = vld [vmem:[%s2365_s1] sm:$0xf] (!%p188_p2)  ;;  %v2041_v4 = vmov (!%p188_p2), 0  }
   0x7   : > { %1878 = vmatpush3.msk.msra.mxu0 (!%p188_p2), %vm308_vm0, %v2083_v0  ;;  %1822 = vmatpush3.msk.msra.mxu1 (!%p188_p2), %vm308_vm0, %v275_v1  ;;  %v1550_v5 = vld [vmem:[%s2366_s2] sm:$0xff] (!%p188_p2)  ;;  %vm283_vm1 = vcmask (!%p188_p2), 31744   ;;  %v280_v6 = vld [vmem:[%s2365_s1 + $0x18] sm:$0xf] (!%p188_p2)  ;;  %vm557_vm2 = vcmask (!%p188_p2), 1046528   ;;  %vm1557_vm3 = vcmask (!%p188_p2), 523264  }
   0x8   : > { %1891 = vmatprep.subr.msk.mxu0 (!%p188_p2), %vm308_vm0, %v279_v2  ;;  %1835 = vmatprep.subr.msk.mxu1 (!%p188_p2), %vm308_vm0, %v274_v3  ;;  %v2145_v17 = vld [vmem:[%s2365_s1 + $0x8] sm:$0xf] (!%p188_p2)  ;;  %v281_v45 = vld [vmem:[%s2365_s1 + $0x1c] sm:$0xf] (!%p188_p2)  ;;  %v277_v63 = vld [vmem:[%s2365_s1 + $0xc] sm:$0xf] (!%p188_p2) }
   0x9   : > { %2030 = vset.pattern.permute.xlu0 (!%p188_p2), %v2041_v4 }
   0xa   : > { %1553 = vperm.xlu0 (!%p188_p2), %2030, %v1550_v5  }
   0xd   : > { %s2371_s19 = smov (!%p214_p3, %s1650_s19), 1 }
   0xe   : > { %s2013_s28 = smul.u32 576, %s2371_s19  ;;  %s1656_s6 = sshll.u32 %s2371_s19, 3 }
   0xf   : > { %s222_s9 = scalar_lea.vmem %s2369_s5, %s1656_s6 }
  0x10   : > { %s2111_s8 = scalar_lea.vmem %s2364_s0, %s2013_s28 }
  0x11   : > { %v241_v7 = vld [vmem:[%s2111_s8 + $0x90] sm:$0xff]  ;;  %v2119_v9 = vld [vmem:[%s2111_s8 + $0xa0] sm:$0xff]  ;;  %v251_v16 = vld [vmem:[%s2111_s8 + $0x128] sm:$0x1] }
  0x12   : > { %v266_v8 = vld [vmem:[%s2111_s8 + $0x1b0] sm:$0xff]  ;;  %1823 = vmatprep.mubr.msk.f32.mxu1 %vm283_vm1, %v241_v7  ;;  %v267_v10 = vld [vmem:[%s2111_s8 + $0x1c0] sm:$0xff]  ;;  %v1003_v20 = vrot.slane %v251_v16, 1  ;;  %v253_v22 = vld [vmem:[%s2111_s8 + $0x138] sm:$0x1] }
  0x13   : > { %1879 = vmatprep.mubr.msk.f32.mxu0 %vm283_vm1, %v266_v8  ;;  %v2125_v11 = vld [vmem:[%s2111_s8 + $0xb0] sm:$0xff]  ;;  %1824 = vmatmul.mubr.msk.f32.vlgmr.msra.gmra.mrb[0].mxu1 %vm283_vm1, %v2119_v9  ;;  %v2132_v13 = vld [vmem:[%s2111_s8 + $0xc0] sm:$0xff]  ;;  %v1006_v24 = vrot.slane %v253_v22, 1  ;;  %v255_v26 = vld [vmem:[%s2111_s8 + $0x148] sm:$0x1] }
  0x14   : > { %v268_v12 = vld [vmem:[%s2111_s8 + $0x1d0] sm:$0xff]  ;;  %1880 = vmatmul.mubr.msk.f32.vlgmr.msra.gmra.mrb[0].mxu0 %vm283_vm1, %v267_v10  ;;  %1826 = vmatprep.mubr.msk.f32.mxu1 %vm283_vm1, %v2125_v11  ;;  %v269_v14 = vld [vmem:[%s2111_s8 + $0x1e0] sm:$0xff]  ;;  %v1009_v29 = vrot.slane %v255_v26, 1  ;;  %v257_v31 = vld [vmem:[%s2111_s8 + $0x158] sm:$0x1] }
  0x15   : > { %1892 = vmatpush3.msk.msra.mxu0 %vm308_vm0, %v279_v2  ;;  %v2139_v15 = vld [vmem:[%s2111_s8 + $0x120] sm:$0xff]  ;;  %1882 = vmatprep.mubr.msk.f32.mxu0 %vm283_vm1, %v268_v12  ;;  %v2149_v18 = vld [vmem:[%s2111_s8 + $0xd0] sm:$0xff]  ;;  %v1012_v35 = vrot.slane %v257_v31, 1  ;;  %v259_v37 = vld [vmem:[%s2111_s8 + $0x168] sm:$0x1] }
  0x16   : > { %v1002_v19 = vrot.slane %v2139_v15, 1  ;;  %1905 = vmatprep.subr.msk.mxu0 %vm308_vm0, %v280_v6  ;;  %v2154_v21 = vld [vmem:[%s2111_s8 + $0x130] sm:$0xff]  ;;  %1836 = vmatpush3.msk.msra.mxu1 %vm308_vm0, %v274_v3  ;;  %v2160_v25 = vld [vmem:[%s2111_s8 + $0x140] sm:$0xff]  ;;  %v1015_v40 = vrot.slane %v259_v37, 1  ;;  %v261_v42 = vld [vmem:[%s2111_s8 + $0x178] sm:$0x1] }
  0x17   : > { %v1005_v23 = vrot.slane %v2154_v21, 1  ;;  %1827 = vmatmul.mubr.msk.f32.gmra.mrb[2].mxu1 %vm283_vm1, %v2132_v13  ;;  %v1008_v28 = vrot.slane %v2160_v25, 1  ;;  %v2169_v30 = vld [vmem:[%s2111_s8 + $0x150] sm:$0xff]  ;;  %v2176_v32 = vld [vmem:[%s2111_s8 + $0xe0] sm:$0xff]  ;;  %1849 = vmatprep.subr.msk.mxu1 %vm308_vm0, %v2145_v17  ;;  %v263_v46 = vld [vmem:[%s2111_s8 + $0x188] sm:$0x1] }
  0x18   : > { %1883 = vmatmul.mubr.msk.f32.gmra.mrb[2].mxu0 %vm283_vm1, %v269_v14  ;;  %v1004_v27 = vsel %vm557_vm2, %v1002_v19, %v1003_v20  ;;  %1829 = vmatprep.mubr.msk.f32.mxu1 %vm283_vm1, %v2149_v18  ;;  %v1011_v34 = vrot.slane %v2169_v30, 1  ;;  %v2181_v36 = vld [vmem:[%s2111_s8 + $0x160] sm:$0xff]  ;;  %v2185_v38 = vld [vmem:[%s2111_s8 + $0xf0] sm:$0xff]  ;;  %v1018_v50 = vrot.slane %v261_v42, 1  ;;  %v1021_v54 = vrot.slane %v263_v46, 1 }
  0x19   : > { %1893 = vmatprep.mubr.msk.f32.mxu0 %vm283_vm1, %v1004_v27  ;;  %v1007_v33 = vsel %vm557_vm2, %v1005_v23, %v1006_v24  ;;  %v1014_v39 = vrot.slane %v2181_v36, 1  ;;  %v2189_v41 = vld [vmem:[%s2111_s8 + $0x170] sm:$0xff]  ;;  %v1010_v43 = vsel %vm557_vm2, %v1008_v28, %v1009_v29  ;;  %v2196_v44 = vld [vmem:[%s2111_s8 + $0x180] sm:$0xff]  ;;  %v265_v56 = vld [vmem:[%s2111_s8 + $0x198] sm:$0x1] }
  0x1a   : > { %v2209_v47 = vld [vmem:[%s2111_s8 + $0x100] sm:$0xff]  ;;  %v1013_v48 = vsel %vm557_vm2, %v1011_v34, %v1012_v35  ;;  %v1017_v49 = vrot.slane %v2189_v41, 1  ;;  %v1020_v53 = vrot.slane %v2196_v44, 1  ;;  %v2218_v55 = vld [vmem:[%s2111_s8 + $0x190] sm:$0xff]  ;;  %v1024_v60 = vrot.slane %v265_v56, 1 }
  0x1b   : > { %1830 = vmatmul.mubr.msk.f32.gmra.mrb[4].mxu1 %vm283_vm1, %v2176_v32  ;;  %v223_v51 = vld [vmem:[%s2111_s8] sm:$0xff]  ;;  %v1016_v52 = vsel %vm557_vm2, %v1014_v39, %v1015_v40  ;;  %v225_v57 = vld [vmem:[%s2111_s8 + $0x10] sm:$0xff]  ;;  %v1023_v59 = vrot.slane %v2218_v55, 1  ;;  %v224_v4 = vld [vmem:[%s2111_s8 + $0x8] sm:$0x1] }
  0x1c   : > { %1894 = vmatmul.mubr.msk.f32.vlgmr.msra.gmra.mrb[0].mxu0 %vm283_vm1, %v1007_v33  ;;  %1832 = vmatprep.mubr.msk.f32.mxu1 %vm283_vm1, %v2185_v38  ;;  %v1019_v58 = vsel %vm557_vm2, %v1017_v49, %v1018_v50  ;;  %v227_v61 = vld [vmem:[%s2111_s8 + $0x20] sm:$0xff]  ;;  %v1022_v62 = vsel %vm557_vm2, %v1020_v53, %v1021_v54  ;;  %v229_v1 = vld [vmem:[%s2111_s8 + $0x30] sm:$0xff]  ;;  %v559_v8 = vrot.slane %v224_v4, 1  ;;  %v226_v10 = vld [vmem:[%s2111_s8 + $0x18] sm:$0x1]  ;;  %v561_v16 = vrot.slane %v225_v57, 1 }
  0x1d   : > { %1906 = vmatpush3.msk.msra.mxu0 %vm308_vm0, %v280_v6  ;;  %1896 = vmatprep.mubr.msk.f32.mxu0 %vm283_vm1, %v1010_v43  ;;  %v1025_v2 = vsel %vm557_vm2, %v1023_v59, %v1024_v60  ;;  %v231_v3 = vld [vmem:[%s2111_s8 + $0x40] sm:$0xff]  ;;  %v233_v5 = vld [vmem:[%s2111_s8 + $0x50] sm:$0xff]  ;;  %v558_v6 = vrot.slane %v223_v51, 1  ;;  %v228_v12 = vld [vmem:[%s2111_s8 + $0x28] sm:$0x1]  ;;  %v562_v19 = vrot.slane %v226_v10, 1 }
  0x1e   : > { %1919 = vmatprep.subr.msk.mxu0 %vm308_vm0, %v281_v45  ;;  %v235_v7 = vld [vmem:[%s2111_s8 + $0x60] sm:$0xff]  ;;  %v564_v20 = vrot.slane %v227_v61, 1  ;;  %v565_v23 = vrot.slane %v228_v12, 1  ;;  %v230_v24 = vld [vmem:[%s2111_s8 + $0x38] sm:$0x1]  ;;  %v567_v27 = vrot.slane %v229_v1, 1 }
  0x1f   : > { %1833 = vmatmul.mubr.msk.f32.gmra.mrb[6].mxu1 %vm283_vm1, %v2209_v47  ;;  %v282_v14 = vld [vmem:[%s2365_s1 + $0x20] sm:$0xf]  ;;  %v560_v22 = vsel %vm557_vm2, %v558_v6, %v559_v8  ;;  %v232_v26 = vld [vmem:[%s2111_s8 + $0x48] sm:$0x1]  ;;  %v563_v28 = vsel %vm557_vm2, %v561_v16, %v562_v19  ;;  %v568_v29 = vrot.slane %v230_v24, 1  ;;  %v570_v31 = vrot.slane %v231_v3, 1 }
  0x20   : > { %1897 = vmatmul.mubr.msk.f32.gmra.mrb[2].mxu0 %vm283_vm1, %v1013_v48  ;;  %1837 = vmatprep.mubr.msk.f32.mxu1 %vm283_vm1, %v223_v51  ;;  %v566_v33 = vsel %vm557_vm2, %v564_v20, %v565_v23  ;;  %v571_v34 = vrot.slane %v232_v26, 1  ;;  %v234_v35 = vld [vmem:[%s2111_s8 + $0x58] sm:$0x1]  ;;  %v236_v37 = vld [vmem:[%s2111_s8 + $0x68] sm:$0x1]  ;;  %v573_v39 = vrot.slane %v233_v5, 1 }
  0x21   : > { %1899 = vmatprep.mubr.msk.f32.mxu0 %vm283_vm1, %v1016_v52  ;;  %v569_v40 = vsel %vm557_vm2, %v567_v27, %v568_v29  ;;  %v239_v42 = vld [vmem:[%s2111_s8 + $0x80] sm:$0xff]  ;;  %v574_v43 = vrot.slane %v234_v35, 1  ;;  %v577_v48 = vrot.slane %v236_v37, 1  ;;  %v238_v49 = vld [vmem:[%s2111_s8 + $0x78] sm:$0x1] }
  0x22   : > { %v572_v46 = vsel %vm557_vm2, %v570_v31, %v571_v34  ;;  %v580_v52 = vrot.slane %v238_v49, 1  ;;  %v1589_v49 = vld [vmem:[%s2367_s3] sm:$0xff] }
  0x23   : > { %1838 = vmatmul.mubr.msk.f32.vlgmr.msra.gmra.mrb[0].mxu1 %vm283_vm1, %v225_v57  ;;  %v575_v51 = vsel %vm557_vm2, %v573_v39, %v574_v43 }
  0x24   : > { %1900 = vmatmul.mubr.msk.f32.gmra.mrb[4].mxu0 %vm283_vm1, %v1019_v58  ;;  %1840 = vmatprep.mubr.msk.f32.mxu1 %vm283_vm1, %v227_v61 }
  0x25   : > { %1902 = vmatprep.mubr.msk.f32.mxu0 %vm283_vm1, %v1022_v62  ;;  %1850 = vmatpush3.msk.msra.mxu1 %vm308_vm0, %v2145_v17  ;;  %v237_v17 = vld [vmem:[%s2111_s8 + $0x70] sm:$0xff] }
  0x26   : > { %1863 = vmatprep.subr.msk.mxu1 %vm308_vm0, %v277_v63  ;;  %v579_v50 = vrot.slane %v237_v17, 1 }
  0x27   : > { %1841 = vmatmul.mubr.msk.f32.gmra.mrb[2].mxu1 %vm283_vm1, %v229_v1 }
  0x28   : > { %1903 = vmatmul.mubr.msk.f32.gmra.mrb[6].mxu0 %vm283_vm1, %v1025_v2  ;;  %1843 = vmatprep.mubr.msk.f32.mxu1 %vm283_vm1, %v231_v3  ;;  %v581_v54 = vsel %vm557_vm2, %v579_v50, %v580_v52 }
  0x29   : > { %1907 = vmatprep.mubr.msk.f32.mxu0 %vm283_vm1, %v225_v57 }
  0x2b   : > { %1844 = vmatmul.mubr.msk.f32.gmra.mrb[4].mxu1 %vm283_vm1, %v233_v5 }
  0x2c   : > { %1908 = vmatmul.mubr.msk.f32.vlgmr.msra.gmra.mrb[0].mxu0 %vm283_vm1, %v227_v61  ;;  %1846 = vmatprep.mubr.msk.f32.mxu1 %vm283_vm1, %v235_v7 }
  0x2d   : > { %1920 = vmatpush3.msk.msra.mxu0 %vm308_vm0, %v281_v45  ;;  %1910 = vmatprep.mubr.msk.f32.mxu0 %vm283_vm1, %v229_v1  ;;  %v576_v45 = vrot.slane %v235_v7, 1 }
  0x2e   : > { %1933 = vmatprep.subr.msk.mxu0 %vm308_vm0, %v282_v14 }
  0x2f   : > { %1847 = vmatmul.mubr.msk.f32.gmra.mrb[6].mxu1 %vm283_vm1, %v237_v17  ;;  %v578_v53 = vsel %vm557_vm2, %v576_v45, %v577_v48 }
  0x30   : > { %1911 = vmatmul.mubr.msk.f32.gmra.mrb[2].mxu0 %vm283_vm1, %v231_v3  ;;  %1851 = vmatprep.mubr.msk.f32.mxu1 %vm283_vm1, %v560_v22 }
  0x31   : > { %1913 = vmatprep.mubr.msk.f32.mxu0 %vm283_vm1, %v233_v5 }
  0x33   : > { %1852 = vmatmul.mubr.msk.f32.vlgmr.msra.gmra.mrb[0].mxu1 %vm283_vm1, %v563_v28 }
  0x34   : > { %1914 = vmatmul.mubr.msk.f32.gmra.mrb[4].mxu0 %vm283_vm1, %v235_v7  ;;  %1854 = vmatprep.mubr.msk.f32.mxu1 %vm283_vm1, %v566_v33 }
  0x35   : > { %1916 = vmatprep.mubr.msk.f32.mxu0 %vm283_vm1, %v237_v17  ;;  %1864 = vmatpush3.msk.msra.mxu1 %vm308_vm0, %v277_v63 }
  0x36   : > { %1947 = vmatprep.subr.msk.mxu1 %vm308_vm0, %v2083_v0 }
  0x37   : > { %1855 = vmatmul.mubr.msk.f32.gmra.mrb[2].mxu1 %vm283_vm1, %v569_v40 }
  0x38   : > { %1917 = vmatmul.mubr.msk.f32.gmra.mrb[6].mxu0 %vm283_vm1, %v239_v42  ;;  %1857 = vmatprep.mubr.msk.f32.mxu1 %vm283_vm1, %v572_v46 }
  0x39   : > { %1921 = vmatprep.mubr.msk.f32.mxu0 %vm283_vm1, %v2119_v9  ;;  %v249_v9 = vld [vmem:[%s2111_s8 + $0x110] sm:$0xff] }
  0x3b   : > { %1858 = vmatmul.mubr.msk.f32.gmra.mrb[4].mxu1 %vm283_vm1, %v575_v51 }
  0x3c   : > { %1922 = vmatmul.mubr.msk.f32.vlgmr.msra.gmra.mrb[0].mxu0 %vm283_vm1, %v2125_v11  ;;  %1860 = vmatprep.mubr.msk.f32.mxu1 %vm283_vm1, %v578_v53  ;;  %v240_v11 = vld [vmem:[%s2111_s8 + $0x88] sm:$0x1] }
  0x3d   : > { %1934 = vmatpush3.msk.msra.mxu0 %vm308_vm0, %v282_v14  ;;  %1924 = vmatprep.mubr.msk.f32.mxu0 %vm283_vm1, %v2132_v13  ;;  %v1397_v13 = vrot.slane %v239_v42, 1 }
  0x3f   : > { %1861 = vmatmul.mubr.msk.f32.gmra.mrb[6].mxu1 %vm283_vm1, %v581_v54 }
  0x40   : > { %1925 = vmatmul.mubr.msk.f32.gmra.mrb[2].mxu0 %vm283_vm1, %v2149_v18  ;;  %1865 = vmatprep.mubr.msk.f32.mxu1 %vm283_vm1, %v2139_v15  ;;  %v271_v15 = vld [vmem:[%s2111_s8 + $0x200] sm:$0xff]  ;;  %v1398_v18 = vrot.slane %v240_v11, 1 }
  0x41   : > { %1927 = vmatprep.mubr.msk.f32.mxu0 %vm283_vm1, %v2176_v32 }
  0x43   : > { %1866 = vmatmul.mubr.msk.f32.vlgmr.msra.gmra.mrb[0].mxu1 %vm283_vm1, %v2154_v21  ;;  %v272_v21 = vld [vmem:[%s2111_s8 + $0x210] sm:$0xff] }
  0x44   : > { %1928 = vmatmul.mubr.msk.f32.gmra.mrb[4].mxu0 %vm283_vm1, %v2185_v38  ;;  %1868 = vmatprep.mubr.msk.f32.mxu1 %vm283_vm1, %v2160_v25  ;;  %v273_v25 = vld [vmem:[%s2111_s8 + $0x220] sm:$0xff] }
  0x45   : > { %1930 = vmatprep.mubr.msk.f32.mxu0 %vm283_vm1, %v2209_v47  ;;  %1948 = vmatpush3.msk.msra.mxu1 %vm308_vm0, %v2083_v0  ;;  %v270_v0 = vld [vmem:[%s2111_s8 + $0x1f0] sm:$0xff] }
  0x47   : > { %1869 = vmatmul.mubr.msk.f32.gmra.mrb[2].mxu1 %vm283_vm1, %v2169_v30  ;;  %v1399_v30 = vsel %vm557_vm2, %v1397_v13, %v1398_v18 }
  0x48   : > { %1931 = vmatmul.mubr.msk.f32.gmra.mrb[6].mxu0 %vm283_vm1, %v249_v9  ;;  %1871 = vmatprep.mubr.msk.f32.mxu1 %vm283_vm1, %v2181_v36 }
  0x49   : > { %1935 = vmatprep.mubr.msk.f32.mxu0 %vm283_vm1, %v563_v28 }
  0x4b   : > { %1872 = vmatmul.mubr.msk.f32.gmra.mrb[4].mxu1 %vm283_vm1, %v2189_v41 }
  0x4c   : > { %1936 = vmatmul.mubr.msk.f32.vlgmr.msra.gmra.mrb[0].mxu0 %vm283_vm1, %v566_v33  ;;  %1874 = vmatprep.mubr.msk.f32.mxu1 %vm283_vm1, %v2196_v44 }
  0x4d   : > { %1938 = vmatprep.mubr.msk.f32.mxu0 %vm283_vm1, %v569_v40 }
  0x4f   : > { %1875 = vmatmul.mubr.msk.f32.gmra.mrb[6].mxu1 %vm283_vm1, %v2218_v55 }
  0x50   : > { %1939 = vmatmul.mubr.msk.f32.gmra.mrb[2].mxu0 %vm283_vm1, %v572_v46  ;;  %1885 = vmatprep.mubr.msk.f32.mxu1 %vm283_vm1, %v270_v0 }
  0x51   : > { %1941 = vmatprep.mubr.msk.f32.mxu0 %vm283_vm1, %v575_v51  ;;  %v1591_v51 = vld [vmem:[%s2368_s4] sm:$0xff] }
  0x53   : > { %1886 = vmatmul.mubr.msk.f32.vlgmr.msra.gmra.mrb[4].mxu1 %vm283_vm1, %v271_v15 }
  0x54   : > { %1942 = vmatmul.mubr.msk.f32.gmra.mrb[4].mxu0 %vm283_vm1, %v578_v53  ;;  %1888 = vmatprep.mubr.msk.f32.mxu1 %vm283_vm1, %v272_v21 }
  0x55   : > { %1944 = vmatprep.mubr.msk.f32.mxu0 %vm283_vm1, %v581_v54 }
  0x57   : > { %1889 = vmatmul.mubr.msk.f32.gmra.mrb[6].mxu1 %vm283_vm1, %v273_v25 }
  0x58   : > { %1945 = vmatmul.mubr.msk.f32.gmra.mrb[6].mxu0 %vm283_vm1, %v1399_v30 }
  0x89   : > { %v1554_v12 = vpop.permute.xlu0 %1553 }
 0x116   : > { %v1867_v32 = vpop.f32.mrb[0].mxu1 }
 0x117   : > { %v807_v36 = vpop.f32.mrb[1].mxu1 }
 0x11a   : > { %v1870_v38 = vpop.f32.mrb[2].mxu1 }
 0x11b   : > { %v817_v41 = vpop.f32.mrb[3].mxu1 }
 0x11f   : > { %v1937_v44 = vpop.f32.mrb[0].mxu0 }
 0x120   : > { %v1949_v47 = vadd.f32 %v1937_v44, %v1867_v32  ;;  %v1471_v55 = vpop.f32.mrb[1].mxu0 }
 0x121   : > { %v1950_v56 = vadd.f32 %v1471_v55, %v807_v36 }
 0x123   : > { %v1940_v57 = vpop.f32.mrb[2].mxu0  ;;  %1518 = vxpose.xlu0.b32.start [1/8] (short) (narrow) %v1950_v56, 8 }
 0x124   : > { %v1951_v58 = vadd.f32 %v1940_v57, %v1870_v38  ;;  %v1481_v59 = vpop.f32.mrb[3].mxu0 }
 0x125   : > { %v1952_v60 = vadd.f32 %v1481_v59, %v817_v41 }
 0x126   : > { %v1887_v62 = vpop.f32.mrb[4].mxu1 }
 0x127   : > { %v1943_v61 = vpop.f32.mrb[4].mxu0  ;;  %1519 = vxpose.xlu0.b32.cont [2/8] (short) (narrow) %v1949_v47, 8  ;;  %v967_v1 = vpop.f32.mrb[5].mxu1 }
 0x128   : > { %v1953_v63 = vadd.f32 %v1943_v61, %v1887_v62  ;;  %v1491_v2 = vpop.f32.mrb[5].mxu0 }
 0x129   : > { %v1954_v3 = vadd.f32 %v1491_v2, %v967_v1 }
 0x12a   : > { %v1890_v5 = vpop.f32.mrb[6].mxu1 }
 0x12b   : > { %v1946_v4 = vpop.f32.mrb[6].mxu0  ;;  %1520 = vxpose.xlu0.b32.cont [3/8] (short) (narrow) %v1952_v60, 8  ;;  %v977_v7 = vpop.f32.mrb[7].mxu1 }
 0x12c   : > { %v1955_v6 = vadd.f32 %v1946_v4, %v1890_v5  ;;  %v1501_v8 = vpop.f32.mrb[7].mxu0 }
 0x12d   : > { %v1956_v10 = vadd.f32 %v1501_v8, %v977_v7 }
 0x12f   : > { %1521 = vxpose.xlu0.b32.cont [4/8] (short) (narrow) %v1951_v58, 8 }
 0x133   : > { %1522 = vxpose.xlu0.b32.cont [5/8] (short) (narrow) %v1954_v3, 8 }
 0x137   : > { %1523 = vxpose.xlu0.b32.cont [6/8] (short) (narrow) %v1953_v63, 8 }
 0x13b   : > { %1524 = vxpose.xlu0.b32.cont [7/8] (short) (narrow) %v1956_v10, 8 }
 0x13f   : > { %1525 = vxpose.xlu0.b32.end [8/8] (short) (narrow) %v1955_v6, 8 }
 0x1a3   : > { %v1534_v14 = vpop.trf.xlu0 }
 0x1a4   : > { %v1556_v16 = vadd.f32 %v1554_v12, %v1534_v14 }
 0x1a6   : > { %v1558_v17 = vsel %vm1557_vm3, %v1556_v16, 0.0 }
 0x1a7   : > { %1559 = vadd.xlane.f32.xlu1 %v1558_v17 }
 0x234   : > { %v1560_v19 = vpop.xlane.xlu1 %1559 }
 0x235   : > { %v1561_v20 = vrot.slane %v1560_v19, 4 }
 0x237   : > { %v1562_v22 = vadd.f32 %v1561_v20, %v1560_v19 }
 0x239   : > { %v1563_v23 = vrot.slane %v1562_v22, 2 }
 0x23b   : > { %v1564_v24 = vadd.f32 %v1563_v23, %v1562_v22 }
 0x23d   : > { %v1565_v26 = vrot.slane %v1564_v24, 1 }
 0x23f   : > { %v1566_v27 = vadd.f32 %v1565_v26, %v1564_v24 }
 0x241   : > { %2014 = vpush %v1566_v27 }
 0x272   : > { %s2015_s21 = spop %2014 }
 0x273   : > { %s1568_s22 = smul.f32 0.001953125, %s2015_s21 }
 0x275   : > { %v1569_v28 = vstv %s1568_s22 }
 0x276   : > { %v1570_v29 = vsub.f32 %v1556_v16, %v1569_v28 }
 0x278   : > { %v1571_v31 = vmul.f32 %v1570_v29, %v1570_v29 }
 0x27a   : > { %v1572_v33 = vsel %vm1557_vm3, %v1571_v31, 0.0 }
 0x27b   : > { %1573 = vadd.xlane.f32.xlu1 %v1572_v33 }
 0x308   : > { %v1574_v34 = vpop.xlane.xlu1 %1573 }
 0x309   : > { %v1575_v35 = vrot.slane %v1574_v34, 4 }
 0x30b   : > { %v1576_v37 = vadd.f32 %v1575_v35, %v1574_v34 }
 0x30d   : > { %v1577_v39 = vrot.slane %v1576_v37, 2 }
 0x30f   : > { %v1578_v40 = vadd.f32 %v1577_v39, %v1576_v37 }
 0x311   : > { %v1579_v42 = vrot.slane %v1578_v40, 1 }
 0x313   : > { %v1580_v43 = vadd.f32 %v1579_v42, %v1578_v40 }
 0x315   : > { %2016 = vpush %v1580_v43 }
 0x346   : > { %s2017_s23 = spop %2016 }
 0x347   : > { %s1582_s24 = smul.f32 0.001953125, %s2017_s23 }
 0x349   : > { %s1583_s25 = sadd.f32 1e-05, %s1582_s24 }
 0x34b   : > { %v1584_v45 = vstv %s1583_s25 }
 0x34c   : > { %2031 = vrsqrt.f32 %v1584_v45 }
 0x356   : > { %v2032_v46 = vpop.eup %2031 }
 0x357   : > { %2018 = vpush %v2032_v46 }
 0x388   : > { %s2019_s26 = spop %2018 }
 0x389   : > { %v1587_v48 = vstv %s2019_s26 }
 0x38a   : > { %v1588_v50 = vmul.f32 %v1587_v48, %v1570_v29 }
 0x38c   : > { %v1590_v52 = vmul.f32 %v1589_v49, %v1588_v50 }
 0x38e   : > { %v1592_v53 = vadd.f32 %v1591_v51, %v1590_v52 }
 0x390   : > { %vm1593_vm4 = vcmp.ge.f32.partialorder %v1592_v53, 0.0  ;;  %v1594_v54 = vmul.f32 0.01, %v1592_v53 }
 0x392   : > { %v1595_v9 = vsel %vm1593_vm4, %v1592_v53, %v1594_v54 }
 0x393   : > { %1596 = vst.msk [vmem:[%s222_s9] sm:$0xff] %vm1557_vm3, %v1595_v9 }
 0x394 PF: > { %s15_s18 = sadd.s32 1, %s2039_s18  }
 0x395   : > { %p12_p4 = scmp.ge.s32.totalorder %s15_s18, 4  }
 0x397   :  { %14 = sbr.rel (!%p12_p4) target bundleno = 1 (0x1), region = 70 }

</bundles_post_ra>
